<compile_context>
chip_gen: v6e
topology: v6e:2x2x1
jax: 0.10.0
libtpu: 0.0.40
codegen_flags: <defaults>
</compile_context>

<pallas_src>
import jax
import jax.numpy as jnp
from jax.experimental import pallas as pl
from jax.experimental.pallas import tpu as pltpu

D = 128          # lane-aligned feature width (hidden/output layers padded to this)
N_LAYERS = 5


def mlp_kernel(x_ref, w_ref, b_ref, o_ref):
    """Fused forward pass for one batch tile.

    x_ref: (tile_b, K0) f32   input activations at (near-)native lane width
    w_ref: (5, D, D)    bf16  zero-padded, pre-transposed weights (y = x @ W)
    b_ref: (5, 1, D)    f32   zero-padded biases
    o_ref: (tile_b, D)  bf16  lane-dense padded output
    """
    k0 = x_ref.shape[1]                                      # static
    h = x_ref[...].astype(jnp.bfloat16)                      # f32 -> bf16 for MXU
    # Layer 1: contract over the real input width via a static weight slice.
    z = jnp.dot(h, w_ref[0][0:k0, :], preferred_element_type=jnp.float32)
    z = jnp.maximum(z + b_ref[0], 0.0)                       # bias+ReLU in f32
    h = z.astype(jnp.bfloat16)
    # Layers 2..4: full 128-wide padded matmuls (zero lanes stay exactly zero).
    for i in range(1, N_LAYERS - 1):
        z = jnp.dot(h, w_ref[i], preferred_element_type=jnp.float32)
        z = jnp.maximum(z + b_ref[i], 0.0)
        h = z.astype(jnp.bfloat16)
    # Layer 5: no ReLU; emit bf16 to halve the output HBM stream.
    z = jnp.dot(h, w_ref[N_LAYERS - 1], preferred_element_type=jnp.float32)
    o_ref[...] = (z + b_ref[N_LAYERS - 1]).astype(o_ref.dtype)


def _round_up(x, m):
    return (x + m - 1) // m * m


def _num_tensorcores_per_chip():
    """v7x has 2 TensorCores per chip; v5e/v6e have 1."""
    try:
        kind = (jax.devices()[0].device_kind or "").lower()
    except Exception:
        return 1
    return 2 if "v7" in kind else 1


def mlp_forward(x, w_stack, b_stack, out_dim, *, tile_b=4096):
    """x: [B, input_dim] f32. Returns [B, out_dim] f32."""
    B, in_dim = x.shape
    assert in_dim <= D and out_dim <= D, "feature dims must fit the 128-wide pad"

    # Keep the contraction dim a multiple of 8 (sublane) without inflating lanes
    # to 128; for typical input_dims (e.g. 32) this is a no-op.
    k0 = _round_up(in_dim, 8)

    # Batch tiling: biggest tile that fits the batch (rows multiple of 8);
    # step overhead dominates here, so fewer/larger steps is better.
    b8 = _round_up(B, 8)
    tb = min(_round_up(tile_b, 8), b8)
    # Megacore split only on 2-TC chips (v7x) and only when each half keeps
    # enough rows (>= 512) to amortize its own per-step overhead.
    if _num_tensorcores_per_chip() >= 2 and b8 // tb < 2 and b8 >= 1024:
        tb = _round_up((b8 + 1) // 2, 8)
    b_pad = _round_up(b8, tb)

    # Minimal padding only (rows to the tile multiple, lanes to k0); no dtype
    # change and no 128-wide lane inflation in HBM.
    pad_rows, pad_cols = b_pad - B, k0 - in_dim
    if pad_rows or pad_cols:
        x = jnp.pad(x, ((0, pad_rows), (0, pad_cols)))

    out = pl.pallas_call(
        mlp_kernel,
        out_shape=jax.ShapeDtypeStruct((b_pad, D), jnp.bfloat16),
        grid=(b_pad // tb,),
        in_specs=[
            pl.BlockSpec((tb, k0), lambda i: (i, 0)),
            # Constant index maps: fetched once, resident across grid steps.
            pl.BlockSpec((N_LAYERS, D, D), lambda i: (0, 0, 0)),
            pl.BlockSpec((N_LAYERS, 1, D), lambda i: (0, 0, 0)),
        ],
        out_specs=pl.BlockSpec((tb, D), lambda i: (i, 0)),
        compiler_params=pltpu.CompilerParams(
            dimension_semantics=("parallel",),
            # Explicit budget valid on every generation (v7x scoped default incl.)
            vmem_limit_bytes=32 * 1024 * 1024,
        ),
    )(x, w_stack, b_stack)

    return out[:B, :out_dim].astype(jnp.float32)


def init_params(key, input_dim, output_dim):
    """PyTorch nn.Linear-style init. Weights stored as [in, out] (pre-transposed)."""
    dims = [input_dim, 64, 48, 24, 12, output_dim]
    params = []
    for i in range(N_LAYERS):
        key, kw, kb = jax.random.split(key, 3)
        fan_in, fan_out = dims[i], dims[i + 1]
        bound = 1.0 / jnp.sqrt(fan_in)
        w = jax.random.uniform(kw, (fan_in, fan_out), jnp.float32, -bound, bound)
        b = jax.random.uniform(kb, (fan_out,), jnp.float32, -bound, bound)
        params.append((w, b))
    return params


def pack_params(params):
    """Zero-pad each layer to [128,128]/[1,128] and stack into single constants."""
    w_stack = jnp.zeros((N_LAYERS, D, D), jnp.float32)
    b_stack = jnp.zeros((N_LAYERS, 1, D), jnp.float32)
    for i, (w, b) in enumerate(params):
        fi, fo = w.shape
        w_stack = w_stack.at[i, :fi, :fo].set(w)
        b_stack = b_stack.at[i, 0, :fo].set(b)
    return w_stack.astype(jnp.bfloat16), b_stack   # weights bf16, biases f32


def mlp_reference(x, params):
    h = x
    for i, (w, b) in enumerate(params):
        h = h @ w + b
        if i < N_LAYERS - 1:
            h = jnp.maximum(h, 0.0)
    return h


if __name__ == "__main__":
    key = jax.random.PRNGKey(0)
    batch, input_dim, output_dim = 64, 32, 4

    key, kx = jax.random.split(key)
    x = jax.random.normal(kx, (batch, input_dim), jnp.float32)
    params = init_params(key, input_dim, output_dim)
    w_stack, b_stack = pack_params(params)

    out = mlp_forward(x, w_stack, b_stack, output_dim)
    out = jax.block_until_ready(out)

    ref = mlp_reference(x, params)
    assert out.shape == (batch, output_dim)
    # bf16 MXU operands + bf16 output with f32 accumulation -> relaxed tolerance
    assert jnp.allclose(out, ref, atol=5e-2, rtol=5e-2), "mismatch vs reference"

    print("KERNEL_OK")
</pallas_src>

<mosaic_0001>
module attributes {stable_mosaic.version = 11 : i64} {
  func.func @mlp_kernel(%arg0: i32, %arg1: memref<64x32xf32, #tpu.memory_space<vmem>>, %arg2: memref<5x128x128xbf16, #tpu.memory_space<vmem>>, %arg3: memref<5x1x128xf32, #tpu.memory_space<vmem>>, %arg4: memref<64x128xbf16, #tpu.memory_space<vmem>>) attributes {dimension_semantics = [#tpu.dimension_semantics<parallel>], iteration_bounds = array<i64: 1>, scalar_prefetch = 0 : i64, scratch_operands = 0 : i64, tpu.core_type = #tpu.core_type<tc>, window_params = [{transform_indices = @transform_0, window_bounds = array<i64: 64, 32>}, {pipeline_mode = #tpu.pipeline_mode<synchronous>, transform_indices = @transform_1, window_bounds = array<i64: 5, 128, 128>}, {pipeline_mode = #tpu.pipeline_mode<synchronous>, transform_indices = @transform_2, window_bounds = array<i64: 5, 1, 128>}, {transform_indices = @transform_3, window_bounds = array<i64: 64, 128>}]} {
    %c0 = arith.constant 0 : index
    %c0_0 = arith.constant 0 : index
    %0 = vector.load %arg1[%c0, %c0_0] : memref<64x32xf32, #tpu.memory_space<vmem>>, vector<64x32xf32>
    %1 = arith.truncf %0 : vector<64x32xf32> to vector<64x32xbf16>
    %c0_1 = arith.constant 0 : index
    %c0_2 = arith.constant 0 : index
    %c0_3 = arith.constant 0 : index
    %2 = vector.load %arg2[%c0_1, %c0_2, %c0_3] : memref<5x128x128xbf16, #tpu.memory_space<vmem>>, vector<1x128x128xbf16>
    %3 = vector.shape_cast %2 : vector<1x128x128xbf16> to vector<128x128xbf16>
    %4 = vector.extract_strided_slice %3 {offsets = [0, 0], sizes = [32, 128], strides = [1, 1]} : vector<128x128xbf16> to vector<32x128xbf16>
    %cst = arith.constant dense<0.000000e+00> : vector<64x128xf32>
    %5 = tpu.matmul %1, %4, %cst {dimension_numbers = #tpu.dot_dimension_numbers<[1], [0], [0], [1], [0, 0, 1, 1], [], []>} : vector<64x32xbf16>, vector<32x128xbf16>, vector<64x128xf32> -> vector<64x128xf32>
    %c0_4 = arith.constant 0 : index
    %c0_5 = arith.constant 0 : index
    %c0_6 = arith.constant 0 : index
    %6 = vector.load %arg3[%c0_4, %c0_5, %c0_6] : memref<5x1x128xf32, #tpu.memory_space<vmem>>, vector<1x1x128xf32>
    %7 = vector.shape_cast %6 : vector<1x1x128xf32> to vector<1x128xf32>
    %8 = vector.broadcast %7 : vector<1x128xf32> to vector<64x128xf32>
    %9 = arith.addf %5, %8 : vector<64x128xf32>
    %cst_7 = arith.constant 0.000000e+00 : f32
    %10 = vector.broadcast %cst_7 : f32 to vector<64x128xf32>
    %11 = arith.maximumf %9, %10 : vector<64x128xf32>
    %12 = arith.truncf %11 : vector<64x128xf32> to vector<64x128xbf16>
    %c1 = arith.constant 1 : index
    %c0_8 = arith.constant 0 : index
    %c0_9 = arith.constant 0 : index
    %13 = vector.load %arg2[%c1, %c0_8, %c0_9] : memref<5x128x128xbf16, #tpu.memory_space<vmem>>, vector<1x128x128xbf16>
    %14 = vector.shape_cast %13 : vector<1x128x128xbf16> to vector<128x128xbf16>
    %cst_10 = arith.constant dense<0.000000e+00> : vector<64x128xf32>
    %15 = tpu.matmul %12, %14, %cst_10 {dimension_numbers = #tpu.dot_dimension_numbers<[1], [0], [0], [1], [0, 0, 1, 1], [], []>} : vector<64x128xbf16>, vector<128x128xbf16>, vector<64x128xf32> -> vector<64x128xf32>
    %c1_11 = arith.constant 1 : index
    %c0_12 = arith.constant 0 : index
    %c0_13 = arith.constant 0 : index
    %16 = vector.load %arg3[%c1_11, %c0_12, %c0_13] : memref<5x1x128xf32, #tpu.memory_space<vmem>>, vector<1x1x128xf32>
    %17 = vector.shape_cast %16 : vector<1x1x128xf32> to vector<1x128xf32>
    %18 = vector.broadcast %17 : vector<1x128xf32> to vector<64x128xf32>
    %19 = arith.addf %15, %18 : vector<64x128xf32>
    %cst_14 = arith.constant 0.000000e+00 : f32
    %20 = vector.broadcast %cst_14 : f32 to vector<64x128xf32>
    %21 = arith.maximumf %19, %20 : vector<64x128xf32>
    %22 = arith.truncf %21 : vector<64x128xf32> to vector<64x128xbf16>
    %c2 = arith.constant 2 : index
    %c0_15 = arith.constant 0 : index
    %c0_16 = arith.constant 0 : index
    %23 = vector.load %arg2[%c2, %c0_15, %c0_16] : memref<5x128x128xbf16, #tpu.memory_space<vmem>>, vector<1x128x128xbf16>
    %24 = vector.shape_cast %23 : vector<1x128x128xbf16> to vector<128x128xbf16>
    %cst_17 = arith.constant dense<0.000000e+00> : vector<64x128xf32>
    %25 = tpu.matmul %22, %24, %cst_17 {dimension_numbers = #tpu.dot_dimension_numbers<[1], [0], [0], [1], [0, 0, 1, 1], [], []>} : vector<64x128xbf16>, vector<128x128xbf16>, vector<64x128xf32> -> vector<64x128xf32>
    %c2_18 = arith.constant 2 : index
    %c0_19 = arith.constant 0 : index
    %c0_20 = arith.constant 0 : index
    %26 = vector.load %arg3[%c2_18, %c0_19, %c0_20] : memref<5x1x128xf32, #tpu.memory_space<vmem>>, vector<1x1x128xf32>
    %27 = vector.shape_cast %26 : vector<1x1x128xf32> to vector<1x128xf32>
    %28 = vector.broadcast %27 : vector<1x128xf32> to vector<64x128xf32>
    %29 = arith.addf %25, %28 : vector<64x128xf32>
    %cst_21 = arith.constant 0.000000e+00 : f32
    %30 = vector.broadcast %cst_21 : f32 to vector<64x128xf32>
    %31 = arith.maximumf %29, %30 : vector<64x128xf32>
    %32 = arith.truncf %31 : vector<64x128xf32> to vector<64x128xbf16>
    %c3 = arith.constant 3 : index
    %c0_22 = arith.constant 0 : index
    %c0_23 = arith.constant 0 : index
    %33 = vector.load %arg2[%c3, %c0_22, %c0_23] : memref<5x128x128xbf16, #tpu.memory_space<vmem>>, vector<1x128x128xbf16>
    %34 = vector.shape_cast %33 : vector<1x128x128xbf16> to vector<128x128xbf16>
    %cst_24 = arith.constant dense<0.000000e+00> : vector<64x128xf32>
    %35 = tpu.matmul %32, %34, %cst_24 {dimension_numbers = #tpu.dot_dimension_numbers<[1], [0], [0], [1], [0, 0, 1, 1], [], []>} : vector<64x128xbf16>, vector<128x128xbf16>, vector<64x128xf32> -> vector<64x128xf32>
    %c3_25 = arith.constant 3 : index
    %c0_26 = arith.constant 0 : index
    %c0_27 = arith.constant 0 : index
    %36 = vector.load %arg3[%c3_25, %c0_26, %c0_27] : memref<5x1x128xf32, #tpu.memory_space<vmem>>, vector<1x1x128xf32>
    %37 = vector.shape_cast %36 : vector<1x1x128xf32> to vector<1x128xf32>
    %38 = vector.broadcast %37 : vector<1x128xf32> to vector<64x128xf32>
    %39 = arith.addf %35, %38 : vector<64x128xf32>
    %cst_28 = arith.constant 0.000000e+00 : f32
    %40 = vector.broadcast %cst_28 : f32 to vector<64x128xf32>
    %41 = arith.maximumf %39, %40 : vector<64x128xf32>
    %42 = arith.truncf %41 : vector<64x128xf32> to vector<64x128xbf16>
    %c4 = arith.constant 4 : index
    %c0_29 = arith.constant 0 : index
    %c0_30 = arith.constant 0 : index
    %43 = vector.load %arg2[%c4, %c0_29, %c0_30] : memref<5x128x128xbf16, #tpu.memory_space<vmem>>, vector<1x128x128xbf16>
    %44 = vector.shape_cast %43 : vector<1x128x128xbf16> to vector<128x128xbf16>
    %cst_31 = arith.constant dense<0.000000e+00> : vector<64x128xf32>
    %45 = tpu.matmul %42, %44, %cst_31 {dimension_numbers = #tpu.dot_dimension_numbers<[1], [0], [0], [1], [0, 0, 1, 1], [], []>} : vector<64x128xbf16>, vector<128x128xbf16>, vector<64x128xf32> -> vector<64x128xf32>
    %c4_32 = arith.constant 4 : index
    %c0_33 = arith.constant 0 : index
    %c0_34 = arith.constant 0 : index
    %46 = vector.load %arg3[%c4_32, %c0_33, %c0_34] : memref<5x1x128xf32, #tpu.memory_space<vmem>>, vector<1x1x128xf32>
    %47 = vector.shape_cast %46 : vector<1x1x128xf32> to vector<1x128xf32>
    %48 = vector.broadcast %47 : vector<1x128xf32> to vector<64x128xf32>
    %49 = arith.addf %45, %48 : vector<64x128xf32>
    %50 = arith.truncf %49 : vector<64x128xf32> to vector<64x128xbf16>
    %c0_35 = arith.constant 0 : index
    %c0_36 = arith.constant 0 : index
    %51 = vector.load %arg4[%c0_35, %c0_36] : memref<64x128xbf16, #tpu.memory_space<vmem>>, vector<64x128xbf16>
    tpu.vector_store %arg4[%c0_35, %c0_36], %50 {strides = array<i32>} : memref<64x128xbf16, #tpu.memory_space<vmem>>, vector<64x128xbf16>,
    return
  }
  func.func @transform_0(%arg0: i32) -> (i32, i32) {
    %c0_i32 = arith.constant 0 : i32
    %c0_i32_0 = arith.constant 0 : i32
    return %arg0, %c0_i32 : i32, i32
  }
  func.func @transform_1(%arg0: i32) -> (i32, i32, i32) {
    %c0_i32 = arith.constant 0 : i32
    %c0_i32_0 = arith.constant 0 : i32
    %c0_i32_1 = arith.constant 0 : i32
    %c0_i32_2 = arith.constant 0 : i32
    return %c0_i32, %c0_i32_0, %c0_i32_1 : i32, i32, i32
  }
  func.func @transform_2(%arg0: i32) -> (i32, i32, i32) {
    %c0_i32 = arith.constant 0 : i32
    %c0_i32_0 = arith.constant 0 : i32
    %c0_i32_1 = arith.constant 0 : i32
    %c0_i32_2 = arith.constant 0 : i32
    return %c0_i32, %c0_i32_0, %c0_i32_1 : i32, i32, i32
  }
  func.func @transform_3(%arg0: i32) -> (i32, i32) {
    %c0_i32 = arith.constant 0 : i32
    %c0_i32_0 = arith.constant 0 : i32
    return %arg0, %c0_i32 : i32, i32
  }
}

</mosaic_0001>

<bundles_post_ra>
// kernel: tpu_custom_call.1
= control target key start
LH: loop header
LB: loop body
LE: loop exit
PB: predicated region body
PF: predicated region fallthrough
CT: control target
= control target key end

     0   :  { %8 = vsyncpa [#allocation3], 0  ;;  %s1209_s0 = inlined_call_operand.vmem [shape: f32[64,32], index: 0, kind: input, shape index: {}]   ;;  %s1210_s1 = inlined_call_operand.hbm [shape: bf16[5,128,128], index: 1, kind: input, shape index: {}]   ;;  %s1211_s2 = inlined_call_operand.vmem [shape: f32[5,1,128], index: 2, kind: input, shape index: {}]   ;;  %s1212_s3 = inlined_call_operand.hbm [shape: bf16[64,128], index: 3, kind: output, shape index: {}]  }
   0x1   :  { %9 = vsyncpa [#allocation4], 0  ;;  %s1130_s12 = smov [#allocation2]  }
   0x2   :  { %s17_s13 = sshll.u32 %s1130_s12, 4  ;;  %s18_s13 = int_to_ptr.vmem [resolvable:$true] %s17_s13 }
   0x3   :  { %s1094_s14 = scalar_lea.vmem %s18_s13, 5120  ;;  %p1099_p1 = scmp.lt.s32.totalorder %s18_s13, %s18_s13 }
   0x4   :  { %p1095_p0 = scmp.ne.s32.totalorder %s18_s13, %s1094_s14  ;;  %p1100_p2 = scmp.lt.s32.totalorder %s1094_s14, %s1094_s14 }
   0x6   :  { %p1101_p3 = por %p1100_p2, %p1099_p1 }
   0x8   :  { %p1102_p4 = pnand %p1101_p3, %p1095_p0 }
   0xa   :  { %1105 = shalt.err (!%p1102_p4)
}
   0xb   :  { %s1131_s15 = smov 64   ;;  %s1132_s16 = smov 4  }
   0xc   :  { %23 = dma.hbm_to_vmem [thread:$0]  %s1210_s1, 5120, %s18_s13, [#allocation3], %s1131_s15, %s1131_s15, %s1132_s16  }
   0xd   :  { %1126 = dma.done.wait [#allocation3], 5120  }
   0xe   :  { %1127 = vsyncadd [#allocation3], 4294962176  ;;  %v1052_v0 = vld [vmem:[#allocation2 + $0x8] sm:$0xff]   ;;  %v1053_v1 = vld [vmem:[#allocation2] sm:$0xff]   ;;  %vm65_vm0 = vcmask 261120   ;;  %s1133_s18 = smov [#allocation5]  }
   0xf   :  { %940 = vmatprep.subr.bf16.mxu0 %v1052_v0  ;;  %v30_v2 = vld [vmem:[%s1209_s0] sm:$0xff]  ;;  %v31_v3 = vld [vmem:[%s1209_s0 + $0x8] sm:$0xff]  ;;  %v32_v5 = vld [vmem:[%s1209_s0 + $0x10] sm:$0xff]  ;;  %s788_s19 = sshll.u32 %s1133_s18, 4  ;;  %s789_s19 = int_to_ptr.vmem [resolvable:$true] %s788_s19 }
  0x10   :  { %941 = vmatpush3.bf16.msra.mxu0 %v1052_v0  ;;  %v38_v4 = vpack.c.bf16 %v31_v3, %v30_v2  ;;  %v33_v6 = vld [vmem:[%s1209_s0 + $0x18] sm:$0xff]  ;;  %v34_v7 = vld [vmem:[%s1209_s0 + $0x20] sm:$0xff]  ;;  %v35_v8 = vld [vmem:[%s1209_s0 + $0x28] sm:$0xff]  ;;  %p1111_p6 = scmp.lt.s32.totalorder %s789_s19, %s789_s19 }
  0x11   :  { %942 = vmatprep.subr.bf16.mxu0 %v1053_v1  ;;  %v1054_v9 = vld [vmem:[#allocation2 + $0x78] sm:$0xff]   ;;  %v39_v10 = vpack.c.bf16 %v33_v6, %v32_v5  ;;  %v1055_v11 = vld [vmem:[#allocation2 + $0x70] sm:$0xff]   ;;  %v40_v12 = vpack.c.bf16 %v35_v8, %v34_v7  ;;  %v1056_v15 = vld [vmem:[#allocation2 + $0x68] sm:$0xff]  }
  0x12   :  { %944 = vmatprep.mubr.msk.bf16.mxu0 %vm65_vm0, %v38_v4  ;;  %952 = vmatprep.subr.bf16.mxu1 %v1054_v9  ;;  %v36_v13 = vld [vmem:[%s1209_s0 + $0x30] sm:$0xff]  ;;  %v37_v14 = vld [vmem:[%s1209_s0 + $0x38] sm:$0xff]  ;;  %v1057_v16 = vld [vmem:[#allocation2 + $0x60] sm:$0xff]  }
  0x13   :  { %953 = vmatpush3.bf16.msra.mxu1 %v1054_v9  ;;  %v41_v17 = vpack.c.bf16 %v37_v14, %v36_v13  ;;  %v1058_v18 = vld [vmem:[#allocation2 + $0x58] sm:$0xff]   ;;  %v1059_v19 = vld [vmem:[#allocation2 + $0x50] sm:$0xff]   ;;  %v1060_v20 = vld [vmem:[#allocation2 + $0x48] sm:$0xff]  }
  0x14   :  { %943 = vmatpush3.bf16.msra.mxu0 %v1053_v1  ;;  %954 = vmatprep.subr.bf16.mxu1 %v1055_v11  ;;  %v1061_v21 = vld [vmem:[#allocation2 + $0x40] sm:$0xff]   ;;  %v1062_v22 = vld [vmem:[#allocation2 + $0xb8] sm:$0xff]   ;;  %v1063_v23 = vld [vmem:[#allocation2 + $0xb0] sm:$0xff]  }
  0x15   :  { %976 = vmatprep.subr.bf16.mxu0 %v1062_v22  ;;  %v1064_v24 = vld [vmem:[#allocation2 + $0xa8] sm:$0xff]   ;;  %v1065_v25 = vld [vmem:[#allocation2 + $0xa0] sm:$0xff]   ;;  %v1066_v26 = vld [vmem:[#allocation2 + $0x98] sm:$0xff]  }
  0x16   :  { %v800_v29 = vld [vmem:[%s1211_s2] ss:$0 sm:$0xff]  ;;  %v1067_v56 = vld [vmem:[#allocation2 + $0x90] sm:$0xff]   ;;  %v1068_v57 = vld [vmem:[#allocation2 + $0x88] sm:$0xff]  }
  0x17   :  { %945 = vmatmul.mubr.msk.bf16.vlgmr.msra.gmra.mxu0 %vm65_vm0, %v39_v10  ;;  %955 = vmatpush3.bf16.msra.mxu1 %v1055_v11  ;;  %v1069_v58 = vld [vmem:[#allocation2 + $0x80] sm:$0xff]   ;;  %v1070_v59 = vld [vmem:[#allocation2 + $0xf8] sm:$0xff]   ;;  %v1071_v60 = vld [vmem:[#allocation2 + $0xf0] sm:$0xff]  }
  0x18   :  { %948 = vmatprep.mubr.msk.bf16.mxu0 %vm65_vm0, %v40_v12  ;;  %956 = vmatprep.subr.bf16.mxu1 %v1056_v15  ;;  %v1072_v61 = vld [vmem:[#allocation2 + $0xe8] sm:$0xff]   ;;  %v1073_v62 = vld [vmem:[#allocation2 + $0xe0] sm:$0xff]   ;;  %v1074_v63 = vld [vmem:[#allocation2 + $0xd8] sm:$0xff]  }
  0x19   :  { %977 = vmatpush3.bf16.msra.mxu0 %v1062_v22  ;;  %v808_v2 = vld [vmem:[%s1211_s2 + $0x1] ss:$0 sm:$0xff] }
  0x1a   :  { %978 = vmatprep.subr.bf16.mxu0 %v1063_v23 }
  0x1b   :  { %957 = vmatpush3.bf16.msra.mxu1 %v1056_v15 }
  0x1c   :  { %958 = vmatprep.subr.bf16.mxu1 %v1057_v16 }
  0x1d   :  { %979 = vmatpush3.bf16.msra.mxu0 %v1063_v23 }
  0x1e   :  { %980 = vmatprep.subr.bf16.mxu0 %v1064_v24 }
  0x1f   :  { %949 = vmatmul.mubr.msk.bf16.gmra.mxu0 %vm65_vm0, %v41_v17  ;;  %959 = vmatpush3.bf16.msra.mxu1 %v1057_v16 }
  0x20   :  { %960 = vmatprep.subr.bf16.mxu1 %v1058_v18 }
  0x21   :  { %981 = vmatpush3.bf16.msra.mxu0 %v1064_v24 }
  0x22   :  { %982 = vmatprep.subr.bf16.mxu0 %v1065_v25 }
  0x23   :  { %961 = vmatpush3.bf16.msra.mxu1 %v1058_v18 }
  0x24   :  { %962 = vmatprep.subr.bf16.mxu1 %v1059_v19 }
  0x25   :  { %983 = vmatpush3.bf16.msra.mxu0 %v1065_v25 }
  0x26   :  { %984 = vmatprep.subr.bf16.mxu0 %v1066_v26 }
  0x27   :  { %963 = vmatpush3.bf16.msra.mxu1 %v1059_v19 }
  0x28   :  { %964 = vmatprep.subr.bf16.mxu1 %v1060_v20 }
  0x29   :  { %985 = vmatpush3.bf16.msra.mxu0 %v1066_v26 }
  0x2a   :  { %986 = vmatprep.subr.bf16.mxu0 %v1067_v56 }
  0x2b   :  { %965 = vmatpush3.bf16.msra.mxu1 %v1060_v20 }
  0x2c   :  { %966 = vmatprep.subr.bf16.mxu1 %v1061_v21 }
  0x2d   :  { %987 = vmatpush3.bf16.msra.mxu0 %v1067_v56 }
  0x2e   :  { %988 = vmatprep.subr.bf16.mxu0 %v1068_v57 }
  0x2f   :  { %967 = vmatpush3.bf16.msra.mxu1 %v1061_v21 }
  0x30   :  { %1000 = vmatprep.subr.bf16.mxu1 %v1070_v59 }
  0x31   :  { %989 = vmatpush3.bf16.msra.mxu0 %v1068_v57 }
  0x32   :  { %990 = vmatprep.subr.bf16.mxu0 %v1069_v58 }
  0x35   :  { %991 = vmatpush3.bf16.msra.mxu0 %v1069_v58 }
  0xd7   :  { %v946_v27 = vpop.f32.mrf.mxu0 }
  0xd8   :  { %v121_v33 = vadd.f32 %v946_v27, %v800_v29 }
  0xd9   :  { %v112_v28 = vpop.f32.mrf.mxu0 }
  0xda   :  { %v113_v31 = vadd.f32 %v800_v29, %v112_v28  ;;  %v145_v40 = vmax.f32 %v121_v33, 0.0  ;;  %v1079_v33 = vld [vmem:[#allocation2 + $0x130] sm:$0xff]  }
  0xdb   :  { %v947_v30 = vpop.f32.mrf.mxu0 }
  0xdc   :  { %v124_v32 = vadd.f32 %v947_v30, %v800_v29  ;;  %v143_v38 = vmax.f32 %v113_v31, 0.0  ;;  %v1076_v30 = vld [vmem:[#allocation2 + $0xc8] sm:$0xff]   ;;  %v1077_v31 = vld [vmem:[#allocation2 + $0xc0] sm:$0xff]  }
  0xdd   :  { %v115_v34 = vpop.f32.mrf.mxu0 }
  0xde   :  { %v116_v35 = vadd.f32 %v800_v29, %v115_v34  ;;  %v146_v36 = vmax.f32 %v124_v32, 0.0  ;;  %v1078_v32 = vld [vmem:[#allocation2 + $0x138] sm:$0xff]   ;;  %v1080_v34 = vld [vmem:[#allocation2 + $0x128] sm:$0xff]  }
  0xdf   :  { %v950_v37 = vpop.f32.mrf.mxu0  ;;  %1024 = vmatprep.subr.bf16.mxu0 %v1078_v32 }
  0xe0   :  { %v144_v39 = vmax.f32 %v116_v35, 0.0  ;;  %v152_v43 = vpack.c.bf16 %v146_v36, %v145_v40  ;;  %v137_v47 = vadd.f32 %v950_v37, %v800_v29  ;;  %v1081_v35 = vld [vmem:[#allocation2 + $0x120] sm:$0xff]   ;;  %v1082_v36 = vld [vmem:[#allocation2 + $0x118] sm:$0xff]  }
  0xe1   :  { %v128_v41 = vpop.f32.mrf.mxu0 }
  0xe2   :  { %v151_v42 = vpack.c.bf16 %v144_v39, %v143_v38  ;;  %v129_v45 = vadd.f32 %v800_v29, %v128_v41  ;;  %v149_v53 = vmax.f32 %v137_v47, 0.0  ;;  %v818_v39 = vld [vmem:[%s1211_s2 + $0x2] ss:$0 sm:$0xff] }
  0xe3   :  { %v951_v44 = vpop.f32.mrf.mxu0 }
  0xe4   :  { %v140_v46 = vadd.f32 %v951_v44, %v800_v29  ;;  %968 = vmatprep.mubr.bf16.mxu1 %v151_v42  ;;  %v147_v51 = vmax.f32 %v129_v45, 0.0 }
  0xe5   :  { %v131_v48 = vpop.f32.mrf.mxu0  ;;  %969 = vmatmul.mubr.bf16.vlgmr.msra.gmra.mxu1 %v152_v43 }
  0xe6   :  { %v132_v49 = vadd.f32 %v800_v29, %v131_v48  ;;  %v150_v50 = vmax.f32 %v140_v46, 0.0  ;;  %1001 = vmatpush3.bf16.msra.mxu1 %v1070_v59  ;;  %v1075_v29 = vld [vmem:[#allocation2 + $0xd0] sm:$0xff]  }
  0xe7   :  { %1002 = vmatprep.subr.bf16.mxu1 %v1071_v60 }
  0xe8   :  { %v148_v52 = vmax.f32 %v132_v49, 0.0  ;;  %v154_v55 = vpack.c.bf16 %v150_v50, %v149_v53 }
  0xea   :  { %v153_v54 = vpack.c.bf16 %v148_v52, %v147_v51  ;;  %1003 = vmatpush3.bf16.msra.mxu1 %v1071_v60 }
  0xeb   :  { %1004 = vmatprep.subr.bf16.mxu1 %v1072_v61 }
  0xec   :  { %972 = vmatprep.mubr.bf16.mxu1 %v153_v54 }
  0xed   :  { %973 = vmatmul.mubr.bf16.gmra.mxu1 %v154_v55 }
  0xee   :  { %1005 = vmatpush3.bf16.msra.mxu1 %v1072_v61 }
  0xef   :  { %1006 = vmatprep.subr.bf16.mxu1 %v1073_v62 }
  0xf2   :  { %1007 = vmatpush3.bf16.msra.mxu1 %v1073_v62 }
  0xf3   :  { %1008 = vmatprep.subr.bf16.mxu1 %v1074_v63 }
  0xf6   :  { %1009 = vmatpush3.bf16.msra.mxu1 %v1074_v63 }
  0xf7   :  { %1010 = vmatprep.subr.bf16.mxu1 %v1075_v29 }
  0xfa   :  { %1011 = vmatpush3.bf16.msra.mxu1 %v1075_v29 }
  0xfb   :  { %1012 = vmatprep.subr.bf16.mxu1 %v1076_v30 }
  0xfe   :  { %1013 = vmatpush3.bf16.msra.mxu1 %v1076_v30 }
  0xff   :  { %1014 = vmatprep.subr.bf16.mxu1 %v1077_v31 }
 0x102   :  { %1015 = vmatpush3.bf16.msra.mxu1 %v1077_v31 }
 0x1a5   :  { %v970_v0 = vpop.f32.mrf.mxu1 }
 0x1a6   :  { %v271_v6 = vadd.f32 %v970_v0, %v808_v2 }
 0x1a7   :  { %v262_v1 = vpop.f32.mrf.mxu1 }
 0x1a8   :  { %v263_v4 = vadd.f32 %v808_v2, %v262_v1  ;;  %v295_v13 = vmax.f32 %v271_v6, 0.0 }
 0x1a9   :  { %v971_v3 = vpop.f32.mrf.mxu1 }
 0x1aa   :  { %v274_v5 = vadd.f32 %v971_v3, %v808_v2  ;;  %v293_v11 = vmax.f32 %v263_v4, 0.0  ;;  %v1084_v3 = vld [vmem:[#allocation2 + $0x108] sm:$0xff]   ;;  %v1085_v4 = vld [vmem:[#allocation2 + $0x100] sm:$0xff]  }
 0x1ab   :  { %v265_v7 = vpop.f32.mrf.mxu1 }
 0x1ac   :  { %v266_v8 = vadd.f32 %v808_v2, %v265_v7  ;;  %v296_v9 = vmax.f32 %v274_v5, 0.0  ;;  %v828_v7 = vld [vmem:[%s1211_s2 + $0x3] ss:$0 sm:$0xff] }
 0x1ad   :  { %v974_v10 = vpop.f32.mrf.mxu1 }
 0x1ae   :  { %v294_v12 = vmax.f32 %v266_v8, 0.0  ;;  %v302_v16 = vpack.c.bf16 %v296_v9, %v295_v13  ;;  %v287_v20 = vadd.f32 %v974_v10, %v808_v2 }
 0x1af   :  { %v278_v14 = vpop.f32.mrf.mxu1 }
 0x1b0   :  { %v301_v15 = vpack.c.bf16 %v294_v12, %v293_v11  ;;  %v279_v18 = vadd.f32 %v808_v2, %v278_v14  ;;  %v299_v26 = vmax.f32 %v287_v20, 0.0 }
 0x1b1   :  { %v975_v17 = vpop.f32.mrf.mxu1 }
 0x1b2   :  { %v290_v19 = vadd.f32 %v975_v17, %v808_v2  ;;  %992 = vmatprep.mubr.bf16.mxu0 %v301_v15  ;;  %v297_v24 = vmax.f32 %v279_v18, 0.0 }
 0x1b3   :  { %v281_v21 = vpop.f32.mrf.mxu1  ;;  %993 = vmatmul.mubr.bf16.vlgmr.msra.gmra.mxu0 %v302_v16 }
 0x1b4   :  { %v282_v22 = vadd.f32 %v808_v2, %v281_v21  ;;  %v300_v23 = vmax.f32 %v290_v19, 0.0  ;;  %1025 = vmatpush3.bf16.msra.mxu0 %v1078_v32  ;;  %v1083_v2 = vld [vmem:[#allocation2 + $0x110] sm:$0xff]  }
 0x1b5   :  { %1026 = vmatprep.subr.bf16.mxu0 %v1079_v33 }
 0x1b6   :  { %v298_v25 = vmax.f32 %v282_v22, 0.0  ;;  %v304_v28 = vpack.c.bf16 %v300_v23, %v299_v26 }
 0x1b8   :  { %v303_v27 = vpack.c.bf16 %v298_v25, %v297_v24  ;;  %1027 = vmatpush3.bf16.msra.mxu0 %v1079_v33 }
 0x1b9   :  { %1028 = vmatprep.subr.bf16.mxu0 %v1080_v34 }
 0x1ba   :  { %996 = vmatprep.mubr.bf16.mxu0 %v303_v27 }
 0x1bb   :  { %997 = vmatmul.mubr.bf16.gmra.mxu0 %v304_v28 }
 0x1bc   :  { %1029 = vmatpush3.bf16.msra.mxu0 %v1080_v34 }
 0x1bd   :  { %1030 = vmatprep.subr.bf16.mxu0 %v1081_v35 }
 0x1c0   :  { %1031 = vmatpush3.bf16.msra.mxu0 %v1081_v35  ;;  %v838_v35 = vld [vmem:[%s1211_s2 + $0x4] ss:$0 sm:$0xff]  ;;  %s1106_s2 = scalar_lea.vmem %s789_s19, 512 }
 0x1c1   :  { %1032 = vmatprep.subr.bf16.mxu0 %v1082_v36  ;;  %p1107_p5 = scmp.ne.s32.totalorder %s789_s19, %s1106_s2  ;;  %p1112_p7 = scmp.lt.s32.totalorder %s1106_s2, %s1106_s2 }
 0x1c3   :  { %p1113_p8 = por %p1112_p7, %p1111_p6 }
 0x1c4   :  { %1033 = vmatpush3.bf16.msra.mxu0 %v1082_v36 }
 0x1c5   :  { %1034 = vmatprep.subr.bf16.mxu0 %v1083_v2  ;;  %p1114_p9 = pnand %p1113_p8, %p1107_p5 }
 0x1c8   :  { %1035 = vmatpush3.bf16.msra.mxu0 %v1083_v2 }
 0x1c9   :  { %1036 = vmatprep.subr.bf16.mxu0 %v1084_v3 }
 0x1cc   :  { %1037 = vmatpush3.bf16.msra.mxu0 %v1084_v3 }
 0x1cd   :  { %1038 = vmatprep.subr.bf16.mxu0 %v1085_v4 }
 0x1d0   :  { %1039 = vmatpush3.bf16.msra.mxu0 %v1085_v4 }
 0x273   :  { %v994_v37 = vpop.f32.mrf.mxu0 }
 0x274   :  { %v421_v43 = vadd.f32 %v994_v37, %v818_v39 }
 0x275   :  { %v412_v38 = vpop.f32.mrf.mxu0 }
 0x276   :  { %v413_v41 = vadd.f32 %v818_v39, %v412_v38  ;;  %v445_v50 = vmax.f32 %v421_v43, 0.0 }
 0x277   :  { %v995_v40 = vpop.f32.mrf.mxu0 }
 0x278   :  { %v424_v42 = vadd.f32 %v995_v40, %v818_v39  ;;  %v443_v48 = vmax.f32 %v413_v41, 0.0 }
 0x279   :  { %v415_v44 = vpop.f32.mrf.mxu0 }
 0x27a   :  { %v416_v45 = vadd.f32 %v818_v39, %v415_v44  ;;  %v446_v46 = vmax.f32 %v424_v42, 0.0 }
 0x27b   :  { %v998_v47 = vpop.f32.mrf.mxu0 }
 0x27c   :  { %v444_v49 = vmax.f32 %v416_v45, 0.0  ;;  %v452_v53 = vpack.c.bf16 %v446_v46, %v445_v50  ;;  %v437_v57 = vadd.f32 %v998_v47, %v818_v39 }
 0x27d   :  { %v428_v51 = vpop.f32.mrf.mxu0 }
 0x27e   :  { %v451_v52 = vpack.c.bf16 %v444_v49, %v443_v48  ;;  %v429_v55 = vadd.f32 %v818_v39, %v428_v51  ;;  %v449_v63 = vmax.f32 %v437_v57, 0.0 }
 0x27f   :  { %v999_v54 = vpop.f32.mrf.mxu0 }
 0x280   :  { %v440_v56 = vadd.f32 %v999_v54, %v818_v39  ;;  %1016 = vmatprep.mubr.bf16.mxu1 %v451_v52  ;;  %v447_v61 = vmax.f32 %v429_v55, 0.0 }
 0x281   :  { %v431_v58 = vpop.f32.mrf.mxu0  ;;  %1017 = vmatmul.mubr.bf16.vlgmr.msra.gmra.mxu1 %v452_v53 }
 0x282   :  { %v432_v59 = vadd.f32 %v818_v39, %v431_v58  ;;  %v450_v60 = vmax.f32 %v440_v56, 0.0 }
 0x284   :  { %v448_v62 = vmax.f32 %v432_v59, 0.0  ;;  %v454_v1 = vpack.c.bf16 %v450_v60, %v449_v63 }
 0x286   :  { %v453_v0 = vpack.c.bf16 %v448_v62, %v447_v61 }
 0x288   :  { %1020 = vmatprep.mubr.bf16.mxu1 %v453_v0 }
 0x289   :  { %1021 = vmatmul.mubr.bf16.gmra.mxu1 %v454_v1 }
 0x341   :  { %v1018_v5 = vpop.f32.mrf.mxu1 }
 0x342   :  { %v571_v11 = vadd.f32 %v1018_v5, %v828_v7 }
 0x343   :  { %v562_v6 = vpop.f32.mrf.mxu1 }
 0x344   :  { %v563_v9 = vadd.f32 %v828_v7, %v562_v6  ;;  %v595_v18 = vmax.f32 %v571_v11, 0.0 }
 0x345   :  { %v1019_v8 = vpop.f32.mrf.mxu1 }
 0x346   :  { %v574_v10 = vadd.f32 %v1019_v8, %v828_v7  ;;  %v593_v16 = vmax.f32 %v563_v9, 0.0 }
 0x347   :  { %v565_v12 = vpop.f32.mrf.mxu1 }
 0x348   :  { %v566_v13 = vadd.f32 %v828_v7, %v565_v12  ;;  %v596_v14 = vmax.f32 %v574_v10, 0.0 }
 0x349   :  { %v1022_v15 = vpop.f32.mrf.mxu1 }
 0x34a   :  { %v594_v17 = vmax.f32 %v566_v13, 0.0  ;;  %v602_v21 = vpack.c.bf16 %v596_v14, %v595_v18  ;;  %v587_v25 = vadd.f32 %v1022_v15, %v828_v7 }
 0x34b   :  { %v578_v19 = vpop.f32.mrf.mxu1 }
 0x34c   :  { %v601_v20 = vpack.c.bf16 %v594_v17, %v593_v16  ;;  %v579_v23 = vadd.f32 %v828_v7, %v578_v19  ;;  %v599_v31 = vmax.f32 %v587_v25, 0.0 }
 0x34d   :  { %v1023_v22 = vpop.f32.mrf.mxu1 }
 0x34e   :  { %v590_v24 = vadd.f32 %v1023_v22, %v828_v7  ;;  %1040 = vmatprep.mubr.bf16.mxu0 %v601_v20  ;;  %v597_v29 = vmax.f32 %v579_v23, 0.0 }
 0x34f   :  { %v581_v26 = vpop.f32.mrf.mxu1  ;;  %1041 = vmatmul.mubr.bf16.vlgmr.msra.gmra.mxu0 %v602_v21 }
 0x350   :  { %v582_v27 = vadd.f32 %v828_v7, %v581_v26  ;;  %v600_v28 = vmax.f32 %v590_v24, 0.0 }
 0x352   :  { %v598_v30 = vmax.f32 %v582_v27, 0.0  ;;  %v604_v33 = vpack.c.bf16 %v600_v28, %v599_v31 }
 0x354   :  { %v603_v32 = vpack.c.bf16 %v598_v30, %v597_v29 }
 0x356   :  { %1044 = vmatprep.mubr.bf16.mxu0 %v603_v32 }
 0x357   :  { %1045 = vmatmul.mubr.bf16.gmra.mxu0 %v604_v33 }
 0x40f   :  { %v1042_v34 = vpop.f32.mrf.mxu0 }
 0x410   :  { %v721_v38 = vadd.f32 %v1042_v34, %v838_v35 }
 0x411   :  { %v712_v36 = vpop.f32.mrf.mxu0 }
 0x412   :  { %v713_v41 = vadd.f32 %v838_v35, %v712_v36 }
 0x413   :  { %v1043_v37 = vpop.f32.mrf.mxu0 }
 0x414   :  { %v724_v39 = vadd.f32 %v1043_v37, %v838_v35 }
 0x415   :  { %v715_v40 = vpop.f32.mrf.mxu0 }
 0x416   :  { %v871_v42 = vpack.c.bf16 %v724_v39, %v721_v38  ;;  %v716_v43 = vadd.f32 %v838_v35, %v715_v40 }
 0x417   :  { %v1046_v44 = vpop.f32.mrf.mxu0 }
 0x418   :  { %883 = vst [vmem:[#allocation5 + $0x8] sm:$0xff] %v871_v42   ;;  %v866_v45 = vpack.c.bf16 %v716_v43, %v713_v41  ;;  %v737_v48 = vadd.f32 %v1046_v44, %v838_v35 }
 0x419   :  { %v728_v46 = vpop.f32.mrf.mxu0 }
 0x41a   :  { %867 = vst [vmem:[#allocation5] sm:$0xff] %v866_v45   ;;  %v729_v51 = vadd.f32 %v838_v35, %v728_v46 }
 0x41b   :  { %v1047_v47 = vpop.f32.mrf.mxu0 }
 0x41c   :  { %v740_v49 = vadd.f32 %v1047_v47, %v838_v35 }
 0x41d   :  { %v731_v50 = vpop.f32.mrf.mxu0 }
 0x41e   :  { %v881_v52 = vpack.c.bf16 %v740_v49, %v737_v48  ;;  %v732_v53 = vadd.f32 %v838_v35, %v731_v50 }
 0x420   :  { %885 = vst [vmem:[#allocation5 + $0x18] sm:$0xff] %v881_v52   ;;  %v876_v54 = vpack.c.bf16 %v732_v53, %v729_v51 }
 0x422   :  { %884 = vst [vmem:[#allocation5 + $0x10] sm:$0xff] %v876_v54  }
 0x423   :  { %1117 = shalt.err (!%p1114_p9)
}
 0x424   :  { %794 = dma.vmem_to_hbm [thread:$0]  %s789_s19, 512, %s1212_s3, [#allocation4], %s1131_s15, %s1131_s15, %s1132_s16  }
 0x425   :  { %1128 = dma.done.wait [#allocation4], 512  }
 0x426   :  { %1129 = vsyncadd [#allocation4], 4294966784 }
 0x427   :  { %798 = vsyncpa [#allocation3], 1 }
 0x428   :  { %799 = vsyncpa [#allocation4], 1 }

</bundles_post_ra>
